<compile_context>
chip_gen: v7x
topology: tpu7x:2x2x1
jax: 0.10.0
libtpu: 0.0.40
codegen_flags: <defaults>
</compile_context>

<pallas_src>
import functools

import jax
import jax.numpy as jnp
import numpy as np
from jax import lax
from jax.experimental import pallas as pl
from jax.experimental.pallas import tpu as pltpu


def _round_up(x, m):
    return ((x + m - 1) // m) * m


def _choose_tile_n(n, c, in_itemsize):
    """Pick the row-tile size from a VMEM working-set budget.

    Budget (per grid step): double-buffered logits block + ~3 (tile_n, C) f32
    elementwise intermediates + the lane-padded int32 target column.  20 MiB
    keeps comfortable headroom under the 32 MiB vmem limit (and under v7x's
    64 MiB physical VMEM per TensorCore).
    """
    budget = 20 * 1024 * 1024
    per_row = 2 * c * in_itemsize + 3 * c * 4 + 2 * 128 * 4
    tile_max = max(16, budget // per_row)
    # Target a >= ~4 MiB logits block so per-step overhead is amortized.
    tile_want = max(256, -(-(4 * 1024 * 1024) // (c * in_itemsize)))
    tile_n = min(tile_max, tile_want)
    # Keep at least 2 grid steps when N is large enough: v7x has 2 TCs and the
    # "parallel" row axis + double-buffering are useless with a single step.
    if n >= 32:
        tile_n = min(tile_n, _round_up(-(-n // 2), 16))
    # Multiple of 16 rows: matches bf16 sublane packing (and f32's 8).
    tile_n = max(16, (tile_n // 16) * 16)
    if tile_n >= n:
        tile_n = n  # single block covering the full row extent (always legal)
    return tile_n


def _celoss_kernel(x_ref, t_ref, out_ref, *, n_total, tile_n):
    """Per-tile partial cross-entropy sum and top-1/top-5 correct counts.

    x_ref:   (TILE_N, C) logits in VMEM, kept in their input dtype
    t_ref:   (TILE_N, 1) int32 class indices in VMEM
    out_ref: (8, 128) f32; row 0 lanes [0,1,2] = [nll_sum, acc1, acc5], rest 0
    """
    i = pl.program_id(0)
    x = x_ref[...]                                      # (TILE_N, C), input dtype
    t = t_ref[...]                                      # (TILE_N, 1) int32
    tn, c = x.shape

    # Row-validity mask for the (possibly padded) last tile.
    row = lax.broadcasted_iota(jnp.int32, (tn, 1), 0) + i * tile_n
    row_mask = row < n_total                            # (TILE_N, 1) bool

    # One-hot mask from a (1, C) iota broadcast against the target column.
    col = lax.broadcasted_iota(jnp.int32, (1, c), 1)    # (1, C)
    onehot = col == t                                   # (TILE_N, C) bool

    # Target logit: one-hot select + reduce (exact in the input dtype — only
    # one non-zero term per row).
    zero = jnp.zeros((), x.dtype)
    tgt_logit = jnp.sum(jnp.where(onehot, x, zero), axis=-1, keepdims=True)

    # Row max in input dtype (exact); only the exp/log-sum-exp chain is f32.
    m = jnp.max(x, axis=-1, keepdims=True)              # (TILE_N, 1), x.dtype
    m32 = m.astype(jnp.float32)
    e = jnp.exp(x.astype(jnp.float32) - m32)            # (TILE_N, C) f32
    lse = m32 + jnp.log(jnp.sum(e, axis=-1, keepdims=True))

    nll = lse - tgt_logit.astype(jnp.float32)
    nll_sum = jnp.sum(jnp.where(row_mask, nll, 0.0))

    # rank(target) = #logits strictly greater than the target logit.  The
    # compare runs in the input dtype; the 0/1 indicator accumulates in f32.
    greater = jnp.sum((x > tgt_logit).astype(jnp.float32),
                      axis=-1, keepdims=True)           # (TILE_N, 1) f32
    a1 = jnp.sum(jnp.where(row_mask & (greater < 1.0), 1.0, 0.0))
    a5 = jnp.sum(jnp.where(row_mask & (greater < 5.0), 1.0, 0.0))

    # Full (8, 128) unmasked store; row 0 carries the three partials.
    lane = lax.broadcasted_iota(jnp.int32, (8, 128), 1)
    sub = lax.broadcasted_iota(jnp.int32, (8, 128), 0)
    out_ref[...] = jnp.where((sub == 0) & (lane == 0), nll_sum,
                   jnp.where((sub == 0) & (lane == 1), a1,
                   jnp.where((sub == 0) & (lane == 2), a5, 0.0)))


def celoss_forward(inputs, target, loss_weight=1.0, tile_n=None):
    """JAX/Pallas equivalent of CELoss.forward(input, target).

    Returns (loss_cls, (acc_top1, acc_top5)), all scalar float32.
    """
    # Squeeze only trailing singleton spatial dims (keeps N==1 / C==1 intact).
    trailing = tuple(ax for ax in range(2, inputs.ndim) if inputs.shape[ax] == 1)
    logits = jnp.squeeze(inputs, axis=trailing) if trailing else inputs
    if logits.ndim != 2:
        raise ValueError(f"expected (N, C) logits after squeeze, got {logits.shape}")
    n, c = logits.shape
    t = target.astype(jnp.int32).reshape(n, 1)

    if tile_n is None:
        tile_n = _choose_tile_n(n, c, logits.dtype.itemsize)
    else:
        tile_n = min(tile_n, n)
    num_tiles = pl.cdiv(n, tile_n)

    cost = pl.CostEstimate(
        flops=8 * n * c,
        transcendentals=n * c,
        bytes_accessed=n * c * logits.dtype.itemsize + n * 4 + num_tiles * 8 * 128 * 4,
    )

    partials = pl.pallas_call(
        functools.partial(_celoss_kernel, n_total=n, tile_n=tile_n),
        out_shape=jax.ShapeDtypeStruct((num_tiles * 8, 128), jnp.float32),
        grid=(num_tiles,),
        in_specs=[
            pl.BlockSpec((tile_n, c), lambda i: (i, 0)),   # logits, original dtype
            pl.BlockSpec((tile_n, 1), lambda i: (i, 0)),   # targets
        ],
        out_specs=pl.BlockSpec((8, 128), lambda i: (i, 0)),
        compiler_params=pltpu.CompilerParams(
            # Per-tile partials (no cross-tile accumulator) -> the row-tile axis
            # can be sharded across both TensorCores on v7x; harmless elsewhere.
            dimension_semantics=("parallel",),
            # Sized for v7x's 64 MiB/TC VMEM (tile chooser targets ~20 MiB).
            vmem_limit_bytes=32 * 1024 * 1024,
        ),
        cost_estimate=cost,
    )(logits, t)

    inv_n = 1.0 / n
    loss = loss_weight * inv_n * jnp.sum(partials[:, 0])
    acc1 = jnp.sum(partials[:, 1]) * (100.0 * inv_n)
    acc5 = jnp.sum(partials[:, 2]) * (100.0 * inv_n)
    return loss, (acc1, acc5)


def _reference(inputs, target, loss_weight=1.0):
    """Pure-JAX reference for verification."""
    logits = inputs.reshape(inputs.shape[0], -1).astype(jnp.float32)
    n, c = logits.shape
    logp = jax.nn.log_softmax(logits, axis=-1)
    idx = target.reshape(n, 1).astype(jnp.int32)
    nll = -jnp.take_along_axis(logp, idx, axis=-1)
    loss = loss_weight * jnp.mean(nll)
    tgt_logit = jnp.take_along_axis(logits, idx, axis=-1)
    rank = jnp.sum(logits > tgt_logit, axis=-1)
    acc1 = jnp.sum(rank < 1) * (100.0 / n)
    acc5 = jnp.sum(rank < 5) * (100.0 / n)
    return loss, (acc1, acc5)


if __name__ == "__main__":
    key = jax.random.PRNGKey(0)
    kx, kt = jax.random.split(key)

    # Classification-head style logits before squeeze: (N, C, 1, 1).
    N, C = 8, 32
    x = jax.random.normal(kx, (N, C, 1, 1), dtype=jnp.float32)
    target = jax.random.randint(kt, (N,), 0, C, dtype=jnp.int32)

    loss, (acc1, acc5) = celoss_forward(x, target, loss_weight=1.0)
    jax.block_until_ready((loss, acc1, acc5))

    ref_loss, (ref_a1, ref_a5) = _reference(x, target, loss_weight=1.0)
    assert np.allclose(np.asarray(loss), np.asarray(ref_loss), rtol=1e-5, atol=1e-5)
    assert np.allclose(np.asarray(acc1), np.asarray(ref_a1))
    assert np.allclose(np.asarray(acc5), np.asarray(ref_a5))

    # Non-trivial grid: N not a multiple of tile_n (padded last tile), bf16
    # logits fed straight from HBM, auto-derived tile_n (>= 2 grid steps).
    N2, C2 = 300, 256
    kx2, kt2 = jax.random.split(kt)
    x2 = jax.random.normal(kx2, (N2, C2, 1, 1), dtype=jnp.float32).astype(jnp.bfloat16)
    t2 = jax.random.randint(kt2, (N2,), 0, C2, dtype=jnp.int32)
    loss2, (a1_2, a5_2) = celoss_forward(x2, t2, loss_weight=0.5)
    jax.block_until_ready((loss2, a1_2, a5_2))
    rloss2, (ra1_2, ra5_2) = _reference(x2.astype(jnp.float32), t2, loss_weight=0.5)
    assert np.allclose(np.asarray(loss2), np.asarray(rloss2), rtol=2e-2, atol=2e-2)
    assert np.allclose(np.asarray(a1_2), np.asarray(ra1_2))
    assert np.allclose(np.asarray(a5_2), np.asarray(ra5_2))

    print("KERNEL_OK")
</pallas_src>

<mosaic_0001>
module attributes {stable_mosaic.version = 11 : i64} {
  func.func @_celoss_kernel(%arg0: i32, %arg1: memref<8x32xf32, #tpu.memory_space<vmem>>, %arg2: memref<8x1xi32, #tpu.memory_space<vmem>>, %arg3: memref<8x128xf32, #tpu.memory_space<vmem>>) attributes {dimension_semantics = [#tpu.dimension_semantics<parallel>], iteration_bounds = array<i64: 1>, scalar_prefetch = 0 : i64, scratch_operands = 0 : i64, tpu.core_type = #tpu.core_type<tc>, window_params = [{transform_indices = @transform_0, window_bounds = array<i64: 8, 32>}, {transform_indices = @transform_1, window_bounds = array<i64: 8, 1>}, {transform_indices = @transform_2, window_bounds = array<i64: 8, 128>}]} {
    %c0 = arith.constant 0 : index
    %c0_0 = arith.constant 0 : index
    %0 = vector.load %arg1[%c0, %c0_0] : memref<8x32xf32, #tpu.memory_space<vmem>>, vector<8x32xf32>
    %c0_1 = arith.constant 0 : index
    %c0_2 = arith.constant 0 : index
    %1 = vector.load %arg2[%c0_1, %c0_2] : memref<8x1xi32, #tpu.memory_space<vmem>>, vector<8x1xi32>
    %2 = tpu.iota {dimensions = array<i32: 0>} : vector<8x1xi32>
    %c8_i32 = arith.constant 8 : i32
    %3 = arith.muli %arg0, %c8_i32 : i32
    %4 = vector.broadcast %3 : i32 to vector<8x1xi32>
    %5 = arith.addi %2, %4 : vector<8x1xi32>
    %c8_i32_3 = arith.constant 8 : i32
    %6 = vector.broadcast %c8_i32_3 : i32 to vector<8x1xi32>
    %7 = arith.cmpi slt, %5, %6 : vector<8x1xi32>
    %8 = tpu.iota {dimensions = array<i32: 1>} : vector<1x32xi32>
    %9 = vector.broadcast %8 : vector<1x32xi32> to vector<8x32xi32>
    %10 = vector.broadcast %1 : vector<8x1xi32> to vector<8x32xi32>
    %11 = arith.cmpi eq, %9, %10 : vector<8x32xi32>
    %cst = arith.constant 0.000000e+00 : f32
    %12 = vector.broadcast %cst : f32 to vector<8x32xf32>
    %13 = arith.select %11, %0, %12 : vector<8x32xi1>, vector<8x32xf32>
    %cst_4 = arith.constant dense<0.000000e+00> : vector<8xf32>
    %14 = vector.multi_reduction <add>, %13, %cst_4 [1] : vector<8x32xf32> to vector<8xf32>
    %15 = vector.shape_cast %14 : vector<8xf32> to vector<8x1xf32>
    %cst_5 = arith.constant dense<0xFF800000> : vector<8xf32>
    %16 = vector.multi_reduction <maximumf>, %0, %cst_5 [1] : vector<8x32xf32> to vector<8xf32>
    %17 = vector.shape_cast %16 : vector<8xf32> to vector<8x1xf32>
    %18 = vector.broadcast %17 : vector<8x1xf32> to vector<8x32xf32>
    %19 = arith.subf %0, %18 : vector<8x32xf32>
    %20 = math.exp %19 : vector<8x32xf32>
    %cst_6 = arith.constant dense<0.000000e+00> : vector<8xf32>
    %21 = vector.multi_reduction <add>, %20, %cst_6 [1] : vector<8x32xf32> to vector<8xf32>
    %22 = vector.shape_cast %21 : vector<8xf32> to vector<8x1xf32>
    %23 = math.log %22 : vector<8x1xf32>
    %24 = arith.addf %17, %23 : vector<8x1xf32>
    %25 = arith.subf %24, %15 : vector<8x1xf32>
    %cst_7 = arith.constant 0.000000e+00 : f32
    %26 = vector.broadcast %cst_7 : f32 to vector<8x1xf32>
    %27 = arith.select %7, %25, %26 : vector<8x1xi1>, vector<8x1xf32>
    %28 = vector.shape_cast %27 : vector<8x1xf32> to vector<1x8x1xf32>
    %cst_8 = arith.constant dense<0.000000e+00> : vector<1xf32>
    %29 = vector.multi_reduction <add>, %28, %cst_8 [1, 2] : vector<1x8x1xf32> to vector<1xf32>
    %30 = vector.shape_cast %29 : vector<1xf32> to vector<1x1x1xf32>
    %31 = vector.extract %30[0, 0, 0] : f32 from vector<1x1x1xf32>
    %32 = vector.broadcast %15 : vector<8x1xf32> to vector<8x32xf32>
    %33 = arith.cmpf ogt, %0, %32 : vector<8x32xf32>
    %34 = arith.extui %33 : vector<8x32xi1> to vector<8x32xi32>
    %35 = arith.sitofp %34 : vector<8x32xi32> to vector<8x32xf32>
    %cst_9 = arith.constant dense<0.000000e+00> : vector<8xf32>
    %36 = vector.multi_reduction <add>, %35, %cst_9 [1] : vector<8x32xf32> to vector<8xf32>
    %37 = vector.shape_cast %36 : vector<8xf32> to vector<8x1xf32>
    %cst_10 = arith.constant 1.000000e+00 : f32
    %38 = vector.broadcast %cst_10 : f32 to vector<8x1xf32>
    %39 = arith.cmpf olt, %37, %38 : vector<8x1xf32>
    %40 = arith.andi %7, %39 : vector<8x1xi1>
    %cst_11 = arith.constant 1.000000e+00 : f32
    %cst_12 = arith.constant 0.000000e+00 : f32
    %41 = vector.broadcast %cst_11 : f32 to vector<8x1xf32>
    %42 = vector.broadcast %cst_12 : f32 to vector<8x1xf32>
    %43 = arith.select %40, %41, %42 : vector<8x1xi1>, vector<8x1xf32>
    %44 = vector.shape_cast %43 : vector<8x1xf32> to vector<1x8x1xf32>
    %cst_13 = arith.constant dense<0.000000e+00> : vector<1xf32>
    %45 = vector.multi_reduction <add>, %44, %cst_13 [1, 2] : vector<1x8x1xf32> to vector<1xf32>
    %46 = vector.shape_cast %45 : vector<1xf32> to vector<1x1x1xf32>
    %47 = vector.extract %46[0, 0, 0] : f32 from vector<1x1x1xf32>
    %cst_14 = arith.constant 5.000000e+00 : f32
    %48 = vector.broadcast %cst_14 : f32 to vector<8x1xf32>
    %49 = arith.cmpf olt, %37, %48 : vector<8x1xf32>
    %50 = arith.andi %7, %49 : vector<8x1xi1>
    %cst_15 = arith.constant 1.000000e+00 : f32
    %cst_16 = arith.constant 0.000000e+00 : f32
    %51 = vector.broadcast %cst_15 : f32 to vector<8x1xf32>
    %52 = vector.broadcast %cst_16 : f32 to vector<8x1xf32>
    %53 = arith.select %50, %51, %52 : vector<8x1xi1>, vector<8x1xf32>
    %54 = vector.shape_cast %53 : vector<8x1xf32> to vector<1x8x1xf32>
    %cst_17 = arith.constant dense<0.000000e+00> : vector<1xf32>
    %55 = vector.multi_reduction <add>, %54, %cst_17 [1, 2] : vector<1x8x1xf32> to vector<1xf32>
    %56 = vector.shape_cast %55 : vector<1xf32> to vector<1x1x1xf32>
    %57 = vector.extract %56[0, 0, 0] : f32 from vector<1x1x1xf32>
    %58 = tpu.iota {dimensions = array<i32: 1>} : vector<8x128xi32>
    %59 = tpu.iota {dimensions = array<i32: 0>} : vector<8x128xi32>
    %c0_i32 = arith.constant 0 : i32
    %60 = vector.broadcast %c0_i32 : i32 to vector<8x128xi32>
    %61 = arith.cmpi eq, %59, %60 : vector<8x128xi32>
    %c0_i32_18 = arith.constant 0 : i32
    %62 = vector.broadcast %c0_i32_18 : i32 to vector<8x128xi32>
    %63 = arith.cmpi eq, %58, %62 : vector<8x128xi32>
    %64 = arith.andi %61, %63 : vector<8x128xi1>
    %c0_i32_19 = arith.constant 0 : i32
    %65 = vector.broadcast %c0_i32_19 : i32 to vector<8x128xi32>
    %66 = arith.cmpi eq, %59, %65 : vector<8x128xi32>
    %c1_i32 = arith.constant 1 : i32
    %67 = vector.broadcast %c1_i32 : i32 to vector<8x128xi32>
    %68 = arith.cmpi eq, %58, %67 : vector<8x128xi32>
    %69 = arith.andi %66, %68 : vector<8x128xi1>
    %c0_i32_20 = arith.constant 0 : i32
    %70 = vector.broadcast %c0_i32_20 : i32 to vector<8x128xi32>
    %71 = arith.cmpi eq, %59, %70 : vector<8x128xi32>
    %c2_i32 = arith.constant 2 : i32
    %72 = vector.broadcast %c2_i32 : i32 to vector<8x128xi32>
    %73 = arith.cmpi eq, %58, %72 : vector<8x128xi32>
    %74 = arith.andi %71, %73 : vector<8x128xi1>
    %cst_21 = arith.constant 0.000000e+00 : f32
    %75 = vector.broadcast %57 : f32 to vector<8x128xf32>
    %76 = vector.broadcast %cst_21 : f32 to vector<8x128xf32>
    %77 = arith.select %74, %75, %76 : vector<8x128xi1>, vector<8x128xf32>
    %78 = vector.broadcast %47 : f32 to vector<8x128xf32>
    %79 = arith.select %69, %78, %77 : vector<8x128xi1>, vector<8x128xf32>
    %80 = vector.broadcast %31 : f32 to vector<8x128xf32>
    %81 = arith.select %64, %80, %79 : vector<8x128xi1>, vector<8x128xf32>
    %c0_22 = arith.constant 0 : index
    %c0_23 = arith.constant 0 : index
    %82 = vector.load %arg3[%c0_22, %c0_23] : memref<8x128xf32, #tpu.memory_space<vmem>>, vector<8x128xf32>
    tpu.vector_store %arg3[%c0_22, %c0_23], %81 {strides = array<i32>} : memref<8x128xf32, #tpu.memory_space<vmem>>, vector<8x128xf32>,
    return
  }
  func.func @transform_0(%arg0: i32) -> (i32, i32) {
    %c0_i32 = arith.constant 0 : i32
    %c0_i32_0 = arith.constant 0 : i32
    return %arg0, %c0_i32 : i32, i32
  }
  func.func @transform_1(%arg0: i32) -> (i32, i32) {
    %c0_i32 = arith.constant 0 : i32
    %c0_i32_0 = arith.constant 0 : i32
    return %arg0, %c0_i32 : i32, i32
  }
  func.func @transform_2(%arg0: i32) -> (i32, i32) {
    %c0_i32 = arith.constant 0 : i32
    %c0_i32_0 = arith.constant 0 : i32
    return %arg0, %c0_i32 : i32, i32
  }
}

</mosaic_0001>

<bundles_post_ra>
// kernel: tpu_custom_call.1
= control target key start
LH: loop header
LB: loop body
LE: loop exit
PB: predicated region body
PF: predicated region fallthrough
CT: control target
= control target key end

     0   :  { %s201_s0 = inlined_call_operand.vmem [shape: f32[8,32], index: 0, kind: input, shape index: {}]   ;;  %s202_s1 = inlined_call_operand.vmem [shape: s32[8,1], index: 1, kind: input, shape index: {}]   ;;  %s203_s2 = inlined_call_operand.hbm [shape: f32[8,128], index: 2, kind: output, shape index: {}]  }
   0x1   :  { %v13_v0 = vld [vmem:[%s202_s1] sm:$0xff] }
   0x2   :  { %7 = vsyncpa [#allocation3], 0  ;;  %v155_v1 = vmov 0   ;;  %v12_v2 = vld [vmem:[%s201_s0] sm:$0xff]  ;;  %vm27_vm0 = vcmask 261120   ;;  %v14_v4 = vlaneseq  ;;  %v156_v15 = vmov 0.0  }
   0x3   :  { %126 = vset.pattern.permute.xlu0 %v155_v1  ;;  %v31_v3 = vsel %vm27_vm0, %v12_v2, -inf  ;;  %vm45_vm3 = vcmask 7168   ;;  %s157_s14 = smov [#allocation2]  }
   0x4   :  { %23 = vperm.xlu0 %126, %v13_v0   ;;  %v180_v5 = vand.u32 127, %v14_v4  ;;  %v15_v50 = vshrl.u32 %v14_v4, 7  ;;  %s108_s15 = sshll.u32 %s157_s14, 4  ;;  %s109_s15 = int_to_ptr.vmem [resolvable:$true] %s108_s15 }
   0x5   :  { %s131_s16 = scalar_lea.vmem %s109_s15, 128  ;;  %p136_p1 = scmp.lt.s32.totalorder %s109_s15, %s109_s15 }
   0x6   :  { %vm88_vm6 = vcmp.eq.s32.totalorder %v15_v50, 0  ;;  %vm93_vm7 = vcmp.eq.s32.totalorder %v180_v5, 2  ;;  %vm91_vm8 = vcmp.eq.s32.totalorder %v180_v5, 1  ;;  %vm89_vm9 = vcmp.eq.s32.totalorder %v180_v5, 0  ;;  %p132_p0 = scmp.ne.s32.totalorder %s109_s15, %s131_s16  ;;  %p137_p2 = scmp.lt.s32.totalorder %s131_s16, %s131_s16 }
   0x7   :  { %vm94_vm10 = vmand %vm88_vm6, %vm93_vm7 }
   0x8   :  { %vm92_vm11 = vmand %vm88_vm6, %vm91_vm8  ;;  %p138_p3 = por %p137_p2, %p136_p1 }
   0x9   :  { %vm90_vm12 = vmand %vm88_vm6, %vm89_vm9 }
   0xa   :  { %p139_p4 = pnand %p138_p3, %p132_p0 }
  0x23   :  { %32 = vmax.xlane.f32.xlu0 %v31_v3 }
  0x83   :  { %v24_v6 = vpop.permute.xlu0 %23 }
  0x84   :  { %vm25_vm1 = vcmp.eq.s32.totalorder %v180_v5, %v24_v6 }
  0x85   :  { %v26_v7 = vsel %vm25_vm1, %v12_v2, 0.0 }
  0x86   :  { %v28_v8 = vsel %vm27_vm0, %v26_v7, 0.0 }
  0x87   :  { %29 = vadd.xlane.f32.xlu1 %v28_v8 }
  0xb0   :  { %v33_v9 = vpop.xlane.xlu0 %32 }
  0xb1   :  { %v34_v10 = vsub.f32 %v12_v2, %v33_v9 }
  0xb3   :  { %v35_v11 = vmul.f32 1.442695, %v34_v10 }
  0xb5   :  { %127 = vpow2.f32 %v35_v11 }
  0xbf   :  { %v128_v12 = vpop.eup %127 }
  0xc0   :  { %v37_v13 = vsel %vm27_vm0, %v128_v12, 0.0 }
  0xc1   :  { %38 = vadd.xlane.f32.xlu1 %v37_v13 }
 0x114   :  { %v30_v14 = vpop.xlane.xlu1 %29 }
 0x115   :  { %vm56_vm2 = vcmp.gt.f32.partialorder %v12_v2, %v30_v14 }
 0x116   :  { %v116_v16 = vsel %vm56_vm2, 1.0, %v156_v15 }
 0x117   :  { %v59_v17 = vsel %vm27_vm0, %v116_v16, 0.0 }
 0x118   :  { %60 = vadd.xlane.f32.xlu1 %v59_v17 }
 0x14e   :  { %v39_v18 = vpop.xlane.xlu1 %38 }
 0x14f   :  { %129 = vlog2.f32 %v39_v18 }
 0x159   :  { %v130_v19 = vpop.eup %129 }
 0x15a   :  { %v41_v20 = vmul.f32 0.6931472, %v130_v19 }
 0x15c   :  { %v42_v21 = vadd.f32 %v41_v20, %v33_v9 }
 0x15e   :  { %v43_v22 = vsub.f32 %v42_v21, %v30_v14 }
 0x160   :  { %v46_v23 = vsel %vm45_vm3, %v43_v22, 0.0 }
 0x161   :  { %47 = vadd.xlane.f32.xlu1 %v46_v23 }
 0x1a5   :  { %v61_v24 = vpop.xlane.xlu1 %60 }
 0x1a6   :  { %vm62_vm4 = vcmp.lt.f32.partialorder %v61_v24, 1.0  ;;  %vm75_vm5 = vcmp.lt.f32.partialorder %v61_v24, 5.0 }
 0x1a7   :  { %v64_v25 = vsel %vm62_vm4, 1.0, %v156_v15  ;;  %v77_v27 = vsel %vm75_vm5, 1.0, %v156_v15 }
 0x1a8   :  { %v65_v26 = vsel %vm45_vm3, %v64_v25, 0.0  ;;  %v78_v28 = vsel %vm45_vm3, %v77_v27, 0.0 }
 0x1a9   :  { %66 = vadd.xlane.f32.xlu1 %v65_v26 }
 0x1ad   :  { %79 = vadd.xlane.f32.xlu1 %v78_v28 }
 0x1ee   :  { %v48_v29 = vpop.xlane.xlu1 %47 }
 0x1ef   :  { %v49_v30 = vrot.slane %v48_v29, 4 }
 0x1f1   :  { %v50_v31 = vadd.f32 %v49_v30, %v48_v29 }
 0x1f3   :  { %v51_v32 = vrot.slane %v50_v31, 2 }
 0x1f5   :  { %v52_v33 = vadd.f32 %v51_v32, %v50_v31 }
 0x1f7   :  { %v53_v34 = vrot.slane %v52_v33, 1 }
 0x1f9   :  { %v54_v35 = vadd.f32 %v53_v34, %v52_v33 }
 0x1fb   :  { %117 = vpush %v54_v35 }
 0x22c   :  { %s118_s0 = spop %117 }
 0x22d   :  { %v99_v54 = vstv %s118_s0 }
 0x236   :  { %v67_v36 = vpop.xlane.xlu1 %66 }
 0x237   :  { %v68_v37 = vrot.slane %v67_v36, 4 }
 0x239   :  { %v69_v38 = vadd.f32 %v68_v37, %v67_v36 }
 0x23a   :  { %v80_v39 = vpop.xlane.xlu1 %79 }
 0x23b   :  { %v70_v40 = vrot.slane %v69_v38, 2  ;;  %v81_v41 = vrot.slane %v80_v39, 4 }
 0x23d   :  { %v82_v42 = vadd.f32 %v81_v41, %v80_v39  ;;  %v71_v43 = vadd.f32 %v70_v40, %v69_v38 }
 0x23f   :  { %v83_v44 = vrot.slane %v82_v42, 2  ;;  %v72_v45 = vrot.slane %v71_v43, 1 }
 0x241   :  { %v84_v46 = vadd.f32 %v83_v44, %v82_v42  ;;  %v73_v47 = vadd.f32 %v72_v45, %v71_v43 }
 0x243   :  { %119 = vpush %v73_v47  ;;  %v85_v48 = vrot.slane %v84_v46, 1 }
 0x245   :  { %v86_v49 = vadd.f32 %v85_v48, %v84_v46 }
 0x247   :  { %121 = vpush %v86_v49 }
 0x274   :  { %s120_s1 = spop %119 }
 0x275   :  { %v97_v52 = vstv %s120_s1 }
 0x278   :  { %s122_s13 = spop %121 }
 0x279   :  { %v95_v51 = vstv %s122_s13 }
 0x27a   :  { %v96_v53 = vsel %vm94_vm10, %v95_v51, 0.0 }
 0x27b   :  { %v98_v55 = vsel %vm92_vm11, %v97_v52, %v96_v53 }
 0x27c   :  { %v100_v56 = vsel %vm90_vm12, %v99_v54, %v98_v55 }
 0x27d   :  { %101 = vst [vmem:[#allocation2] sm:$0xff] %v100_v56 }
 0x27e   :  { %142 = shalt.err (!%p139_p4)
}
 0x27f   :  { %s143_s19 = scalar_lea.hbm %s203_s2, 128 }
 0x280   :  { %p144_p5 = scmp.ne.s32.totalorder %s203_s2, %s143_s19  ;;  %p147_p6 = scmp.lt.u32.totalorder %s143_s19, %s203_s2 }
 0x282   :  { %p149_p7 = pnand %p147_p6, %p144_p5 }
 0x284   :  { %152 = shalt.err (!%p149_p7)
}
 0x285   :  { %111 = dma.vmem_to_hbm [thread:$0]  %s109_s15, 128, %s203_s2, [#allocation3]  }
 0x286   :  { %153 = dma.done.wait [#allocation3], 128  }
 0x287   :  { %154 = vsyncadd [#allocation3], 4294967168 }
 0x288   :  { %115 = vsyncpa [#allocation3], 1 }

</bundles_post_ra>
